<compile_context>
chip_gen: v5e
topology: v5e:2x2
jax: 0.10.0
libtpu: 0.0.40
codegen_flags: <defaults>
</compile_context>

<pallas_src>
import jax
import jax.numpy as jnp
from jax.experimental import pallas as pl
from jax.experimental.pallas import tpu as pltpu

IN_FEATURES = 33 * 10     # 330
H1 = 128
H2 = 64
OUT_FEATURES = 33


def _mlp_kernel(x_ref, w1_ref, b1_ref, w2_ref, b2_ref, w3_ref, b3_ref, o_ref):
    # x arrives as raw f32 rows straight from HBM; cast to bf16 in-register
    # (no extra HBM pass).  K=330 / N=33 are not lane-aligned; Mosaic masks the
    # padded lanes, which is correct and cheap next to the streaming DMA.
    x = x_ref[...].astype(jnp.bfloat16)                          # (TB, 330)

    # fc1 + ReLU (bf16 operands, f32 MXU accumulation; bias/ReLU in f32)
    h1 = jnp.dot(x, w1_ref[...], preferred_element_type=jnp.float32)
    h1 = jnp.maximum(h1 + b1_ref[...], 0.0)                      # (TB, 128) f32

    # fc2 + ReLU
    h2 = jnp.dot(h1.astype(jnp.bfloat16), w2_ref[...],
                 preferred_element_type=jnp.float32)
    h2 = jnp.maximum(h2 + b2_ref[...], 0.0)                      # (TB, 64) f32

    # fc3 — only the 33 real output columns are computed and stored.
    out = jnp.dot(h2.astype(jnp.bfloat16), w3_ref[...],
                  preferred_element_type=jnp.float32)
    o_ref[...] = (out + b3_ref[...]).astype(o_ref.dtype)         # (TB, 33) f32


def _pack_params(params):
    """Cast weights to bf16 (tiny, one-time); biases stay f32.  No padding."""
    w1, b1, w2, b2, w3, b3 = params
    return (w1.astype(jnp.bfloat16), b1,
            w2.astype(jnp.bfloat16), b2,
            w3.astype(jnp.bfloat16), b3)


def _round_up(n, m):
    return ((n + m - 1) // m) * m


def _choose_tb(batch):
    """Batch-tile selection.

    * batch <= 512 -> one full-batch block: block dim == array dim is always
      legal, zero padding rows, zero partial blocks.
    * batch  > 512 -> TB = round_up_16(ceil(batch / n_blocks)) with
      n_blocks >= 2 (both v7x TensorCores) and TB <= 2048 (VMEM headroom);
      the final block may be partial, wasting at most ~16 rows of work/block.
    """
    TB_MAX = 2048
    if batch <= 512:
        return batch
    n_blocks = max(2, -(-batch // TB_MAX))
    return _round_up(-(-batch // n_blocks), 16)


def simple_nn_forward(x, params):
    """x: (B, 33, 10) float32.  Returns (B, 33) float32."""
    B = x.shape[0]
    x_flat = x.reshape(B, IN_FEATURES)                           # nn.Flatten(); no copy

    w1, b1, w2, b2, w3, b3 = _pack_params(params)

    TB = _choose_tb(B)
    n_blocks = pl.cdiv(B, TB)

    const = lambda shape: pl.BlockSpec(shape, lambda i: (0, 0))  # VMEM-resident

    flops = 2 * B * (IN_FEATURES * H1 + H1 * H2 + H2 * OUT_FEATURES)
    bytes_accessed = (B * IN_FEATURES * 4 + B * OUT_FEATURES * 4
                      + (w1.size + w2.size + w3.size) * 2
                      + (b1.size + b2.size + b3.size) * 4)

    out = pl.pallas_call(
        _mlp_kernel,
        out_shape=jax.ShapeDtypeStruct((B, OUT_FEATURES), jnp.float32),
        grid=(n_blocks,),
        in_specs=[
            pl.BlockSpec((TB, IN_FEATURES), lambda i: (i, 0)),   # x: streamed f32
            const((IN_FEATURES, H1)),                            # weights / biases:
            const((1, H1)),                                      # constant block idx
            const((H1, H2)),                                     # -> resident in VMEM
            const((1, H2)),
            const((H2, OUT_FEATURES)),
            const((1, OUT_FEATURES)),
        ],
        out_specs=pl.BlockSpec((TB, OUT_FEATURES), lambda i: (i, 0)),
        compiler_params=pltpu.CompilerParams(
            dimension_semantics=("parallel",)),
        cost_estimate=pl.CostEstimate(
            flops=flops, transcendentals=0, bytes_accessed=bytes_accessed),
    )(x_flat, w1, b1, w2, b2, w3, b3)

    return out


def init_params(key):
    """Deterministic init mimicking nn.Linear defaults (uniform +/- 1/sqrt(fan_in)).

    Weights stored as (in_features, out_features), logical (unpadded) f32."""
    ks = jax.random.split(key, 6)

    def linear(kw, kb, fan_in, fan_out):
        bound = 1.0 / jnp.sqrt(fan_in)
        w = jax.random.uniform(kw, (fan_in, fan_out), jnp.float32, -bound, bound)
        b = jax.random.uniform(kb, (1, fan_out), jnp.float32, -bound, bound)
        return w, b

    w1, b1 = linear(ks[0], ks[1], IN_FEATURES, H1)
    w2, b2 = linear(ks[2], ks[3], H1, H2)
    w3, b3 = linear(ks[4], ks[5], H2, OUT_FEATURES)
    return (w1, b1, w2, b2, w3, b3)


def _reference_forward(x, params):
    """Pure-JAX f32 reference for sanity checking."""
    w1, b1, w2, b2, w3, b3 = params
    h = x.reshape(x.shape[0], -1)
    h = jnp.maximum(h @ w1 + b1, 0.0)
    h = jnp.maximum(h @ w2 + b2, 0.0)
    return h @ w3 + b3


if __name__ == "__main__":
    key = jax.random.PRNGKey(0)
    k_params, k_x = jax.random.split(key)

    params = init_params(k_params)
    # Small batch, input shape consistent with the 33*10 flatten in the module.
    x = jax.random.normal(k_x, (2, 33, 10), dtype=jnp.float32)

    out = jax.block_until_ready(simple_nn_forward(x, params))

    ref = _reference_forward(x, params)
    assert out.shape == (2, OUT_FEATURES)
    assert bool(jnp.all(jnp.isfinite(out)))
    # bf16 operands on the MXU (f32 accumulation) vs an all-f32 reference.
    assert jnp.allclose(out, ref, atol=5e-2, rtol=5e-2)

    print("KERNEL_OK")
</pallas_src>

<mosaic_0001>
module attributes {stable_mosaic.version = 11 : i64} {
  func.func @_mlp_kernel(%arg0: i32, %arg1: memref<2x330xf32, #tpu.memory_space<vmem>>, %arg2: memref<330x128xbf16, #tpu.memory_space<vmem>>, %arg3: memref<1x128xf32, #tpu.memory_space<vmem>>, %arg4: memref<128x64xbf16, #tpu.memory_space<vmem>>, %arg5: memref<1x64xf32, #tpu.memory_space<vmem>>, %arg6: memref<64x33xbf16, #tpu.memory_space<vmem>>, %arg7: memref<1x33xf32, #tpu.memory_space<vmem>>, %arg8: memref<2x33xf32, #tpu.memory_space<vmem>>) attributes {dimension_semantics = [#tpu.dimension_semantics<parallel>], iteration_bounds = array<i64: 1>, scalar_prefetch = 0 : i64, scratch_operands = 0 : i64, tpu.core_type = #tpu.core_type<tc>, window_params = [{transform_indices = @transform_0, window_bounds = array<i64: 2, 330>}, {pipeline_mode = #tpu.pipeline_mode<synchronous>, transform_indices = @transform_1, window_bounds = array<i64: 330, 128>}, {pipeline_mode = #tpu.pipeline_mode<synchronous>, transform_indices = @transform_2, window_bounds = array<i64: 1, 128>}, {pipeline_mode = #tpu.pipeline_mode<synchronous>, transform_indices = @transform_3, window_bounds = array<i64: 128, 64>}, {pipeline_mode = #tpu.pipeline_mode<synchronous>, transform_indices = @transform_4, window_bounds = array<i64: 1, 64>}, {pipeline_mode = #tpu.pipeline_mode<synchronous>, transform_indices = @transform_5, window_bounds = array<i64: 64, 33>}, {pipeline_mode = #tpu.pipeline_mode<synchronous>, transform_indices = @transform_6, window_bounds = array<i64: 1, 33>}, {transform_indices = @transform_7, window_bounds = array<i64: 2, 33>}]} {
    %c0 = arith.constant 0 : index
    %c0_0 = arith.constant 0 : index
    %0 = vector.load %arg1[%c0, %c0_0] : memref<2x330xf32, #tpu.memory_space<vmem>>, vector<2x330xf32>
    %1 = arith.truncf %0 : vector<2x330xf32> to vector<2x330xbf16>
    %c0_1 = arith.constant 0 : index
    %c0_2 = arith.constant 0 : index
    %2 = vector.load %arg2[%c0_1, %c0_2] : memref<330x128xbf16, #tpu.memory_space<vmem>>, vector<330x128xbf16>
    %cst = arith.constant dense<0.000000e+00> : vector<2x128xf32>
    %3 = tpu.matmul %1, %2, %cst {dimension_numbers = #tpu.dot_dimension_numbers<[1], [0], [0], [1], [0, 0, 1, 1], [], []>} : vector<2x330xbf16>, vector<330x128xbf16>, vector<2x128xf32> -> vector<2x128xf32>
    %c0_3 = arith.constant 0 : index
    %c0_4 = arith.constant 0 : index
    %4 = vector.load %arg3[%c0_3, %c0_4] : memref<1x128xf32, #tpu.memory_space<vmem>>, vector<1x128xf32>
    %5 = vector.broadcast %4 : vector<1x128xf32> to vector<2x128xf32>
    %6 = arith.addf %3, %5 : vector<2x128xf32>
    %cst_5 = arith.constant 0.000000e+00 : f32
    %7 = vector.broadcast %cst_5 : f32 to vector<2x128xf32>
    %8 = arith.maximumf %6, %7 : vector<2x128xf32>
    %9 = arith.truncf %8 : vector<2x128xf32> to vector<2x128xbf16>
    %c0_6 = arith.constant 0 : index
    %c0_7 = arith.constant 0 : index
    %10 = vector.load %arg4[%c0_6, %c0_7] : memref<128x64xbf16, #tpu.memory_space<vmem>>, vector<128x64xbf16>
    %cst_8 = arith.constant dense<0.000000e+00> : vector<2x64xf32>
    %11 = tpu.matmul %9, %10, %cst_8 {dimension_numbers = #tpu.dot_dimension_numbers<[1], [0], [0], [1], [0, 0, 1, 1], [], []>} : vector<2x128xbf16>, vector<128x64xbf16>, vector<2x64xf32> -> vector<2x64xf32>
    %c0_9 = arith.constant 0 : index
    %c0_10 = arith.constant 0 : index
    %12 = vector.load %arg5[%c0_9, %c0_10] : memref<1x64xf32, #tpu.memory_space<vmem>>, vector<1x64xf32>
    %13 = vector.broadcast %12 : vector<1x64xf32> to vector<2x64xf32>
    %14 = arith.addf %11, %13 : vector<2x64xf32>
    %cst_11 = arith.constant 0.000000e+00 : f32
    %15 = vector.broadcast %cst_11 : f32 to vector<2x64xf32>
    %16 = arith.maximumf %14, %15 : vector<2x64xf32>
    %17 = arith.truncf %16 : vector<2x64xf32> to vector<2x64xbf16>
    %c0_12 = arith.constant 0 : index
    %c0_13 = arith.constant 0 : index
    %18 = vector.load %arg6[%c0_12, %c0_13] : memref<64x33xbf16, #tpu.memory_space<vmem>>, vector<64x33xbf16>
    %cst_14 = arith.constant dense<0.000000e+00> : vector<2x33xf32>
    %19 = tpu.matmul %17, %18, %cst_14 {dimension_numbers = #tpu.dot_dimension_numbers<[1], [0], [0], [1], [0, 0, 1, 1], [], []>} : vector<2x64xbf16>, vector<64x33xbf16>, vector<2x33xf32> -> vector<2x33xf32>
    %c0_15 = arith.constant 0 : index
    %c0_16 = arith.constant 0 : index
    %20 = vector.load %arg7[%c0_15, %c0_16] : memref<1x33xf32, #tpu.memory_space<vmem>>, vector<1x33xf32>
    %21 = vector.broadcast %20 : vector<1x33xf32> to vector<2x33xf32>
    %22 = arith.addf %19, %21 : vector<2x33xf32>
    %c0_17 = arith.constant 0 : index
    %c0_18 = arith.constant 0 : index
    %23 = vector.load %arg8[%c0_17, %c0_18] : memref<2x33xf32, #tpu.memory_space<vmem>>, vector<2x33xf32>
    tpu.vector_store %arg8[%c0_17, %c0_18], %22 {strides = array<i32>} : memref<2x33xf32, #tpu.memory_space<vmem>>, vector<2x33xf32>,
    return
  }
  func.func @transform_0(%arg0: i32) -> (i32, i32) {
    %c0_i32 = arith.constant 0 : i32
    %c0_i32_0 = arith.constant 0 : i32
    return %arg0, %c0_i32 : i32, i32
  }
  func.func @transform_1(%arg0: i32) -> (i32, i32) {
    %c0_i32 = arith.constant 0 : i32
    %c0_i32_0 = arith.constant 0 : i32
    %c0_i32_1 = arith.constant 0 : i32
    return %c0_i32, %c0_i32_0 : i32, i32
  }
  func.func @transform_2(%arg0: i32) -> (i32, i32) {
    %c0_i32 = arith.constant 0 : i32
    %c0_i32_0 = arith.constant 0 : i32
    %c0_i32_1 = arith.constant 0 : i32
    return %c0_i32, %c0_i32_0 : i32, i32
  }
  func.func @transform_3(%arg0: i32) -> (i32, i32) {
    %c0_i32 = arith.constant 0 : i32
    %c0_i32_0 = arith.constant 0 : i32
    %c0_i32_1 = arith.constant 0 : i32
    return %c0_i32, %c0_i32_0 : i32, i32
  }
  func.func @transform_4(%arg0: i32) -> (i32, i32) {
    %c0_i32 = arith.constant 0 : i32
    %c0_i32_0 = arith.constant 0 : i32
    %c0_i32_1 = arith.constant 0 : i32
    return %c0_i32, %c0_i32_0 : i32, i32
  }
  func.func @transform_5(%arg0: i32) -> (i32, i32) {
    %c0_i32 = arith.constant 0 : i32
    %c0_i32_0 = arith.constant 0 : i32
    %c0_i32_1 = arith.constant 0 : i32
    return %c0_i32, %c0_i32_0 : i32, i32
  }
  func.func @transform_6(%arg0: i32) -> (i32, i32) {
    %c0_i32 = arith.constant 0 : i32
    %c0_i32_0 = arith.constant 0 : i32
    %c0_i32_1 = arith.constant 0 : i32
    return %c0_i32, %c0_i32_0 : i32, i32
  }
  func.func @transform_7(%arg0: i32) -> (i32, i32) {
    %c0_i32 = arith.constant 0 : i32
    %c0_i32_0 = arith.constant 0 : i32
    return %arg0, %c0_i32 : i32, i32
  }
}

</mosaic_0001>

<bundles_post_ra>
// kernel: tpu_custom_call.1
= control target key start
LH: loop header
LB: loop body
LE: loop exit
PB: predicated region body
PF: predicated region fallthrough
CT: control target
= control target key end

     0   :  { %12 = vsyncpa [#allocation3], 0  ;;  %s755_s0 = inlined_call_operand.vmem [shape: f32[2,330], index: 0, kind: input, shape index: {}]   ;;  %s756_s1 = inlined_call_operand.hbm [shape: bf16[330,128], index: 1, kind: input, shape index: {}]   ;;  %s757_s2 = inlined_call_operand.vmem [shape: f32[1,128], index: 2, kind: input, shape index: {}]   ;;  %s758_s3 = inlined_call_operand.vmem [shape: bf16[128,64], index: 3, kind: input, shape index: {}]   ;;  %s759_s4 = inlined_call_operand.vmem [shape: f32[1,64], index: 4, kind: input, shape index: {}]   ;;  %s760_s5 = inlined_call_operand.vmem [shape: bf16[64,33], index: 5, kind: input, shape index: {}]   ;;  %s761_s6 = inlined_call_operand.vmem [shape: f32[1,33], index: 6, kind: input, shape index: {}]   ;;  %s762_s7 = inlined_call_operand.hbm [shape: f32[2,33], index: 7, kind: output, shape index: {}]  }
   0x1   :  { %13 = vsyncpa [#allocation4], 0  ;;  %s20_s26 = sshll.u32 %s756_s1, 4  ;;  %s657_s27 = smov [#allocation2]   ;;  %s21_s26 = int_to_ptr.hbm [resolvable:$true] %s20_s26 }
   0x2   :  { %s22_s28 = sshll.u32 %s657_s27, 4  ;;  %s658_s29 = smov 64   ;;  %s23_s28 = int_to_ptr.vmem [resolvable:$true] %s22_s28 }
   0x3   :  { %s659_s30 = smov 4  }
   0x4   :  { %28 = dma.hbm_to_vmem [thread:$0]  %s21_s26, 2688, %s23_s28, [#allocation3], %s658_s29, %s658_s29, %s659_s30  }
   0x5   :  { %653 = dma.done.wait [#allocation3], 2688  }
   0x6   :  { %654 = vsyncadd [#allocation3], 4294964608  ;;  %v572_v0 = vld [vmem:[#allocation2 + $0x38] sm:$0xff]  ;;  %v513_v2 = vld [vmem:[#allocation2 + $0xa0] sm:$0xf]  ;;  %vm231_vm0 = vcmask 1044480  }
   0x7   :  { %v580_v1 = vld [vmem:[#allocation2 + $0x78] sm:$0xff]  ;;  %v585_v3 = vld [vmem:[#allocation2 + $0xa0] sm:$0x10]  ;;  %235 = vmatpush.bf16.msra.mxu0 %v572_v0  ;;  %v571_v5 = vld [vmem:[#allocation2 + $0x30] sm:$0xff]  ;;  %vm227_vm1 = vcmask 605184   ;;  %vm395_vm2 = vcmask 523264  }
   0x8   :  { %248 = vmatpush.bf16.msra.mxu1 %v580_v1  ;;  %v514_v4 = vor.u32 %v585_v3, %v513_v2  ;;  %v579_v6 = vld [vmem:[#allocation2 + $0x70] sm:$0xff]  ;;  %v584_v8 = vld [vmem:[#allocation2 + $0x98] sm:$0xff]  ;;  %v570_v9 = vld [vmem:[#allocation2 + $0x28] sm:$0xff]  ;;  %s660_s12 = smov [#allocation5]   ;;  %s421_s14 = sshll.u32 %s762_s7, 4  ;;  %vm412_vm3 = vcmask 263168   ;;  %s422_s14 = int_to_ptr.hbm [resolvable:$true] %s421_s14 }
   0x9   :  { %v578_v10 = vld [vmem:[#allocation2 + $0x68] sm:$0xff]  ;;  %v44_v11 = vld [vmem:[%s755_s0] sm:$0x3f]  ;;  %v593_v12 = vld [vmem:[%s758_s3 + $0x38] sm:$0xff]  ;;  %s419_s0 = sshll.u32 %s660_s12, 4  ;;  %s420_s0 = int_to_ptr.vmem [resolvable:$true] %s419_s0 }
   0xa   :  { %v233_v7 = vsel %vm231_vm0, %v514_v4, 0  ;;  %46 = vst [vmem:[#allocation1] ss:$4 sm:$0xff] %v44_v11  ;;  %v583_v13 = vld [vmem:[#allocation2 + $0x90] sm:$0xff]  ;;  %v592_v14 = vld [vmem:[%s758_s3 + $0x30] sm:$0xff]  ;;  %344 = vmatpush.bf16.msra.mxu3 %v593_v12  ;;  %v569_v15 = vld [vmem:[#allocation2 + $0x20] sm:$0xff] }
   0xb   :  { %264 = vmatpush.bf16.msra.mxu2 %v233_v7  ;;  %236 = vmatpush.bf16.msra.mxu0 %v571_v5  ;;  %v577_v16 = vld [vmem:[#allocation2 + $0x60] sm:$0xff]  ;;  %v582_v17 = vld [vmem:[#allocation2 + $0x88] sm:$0xff]  ;;  %v568_v19 = vld [vmem:[#allocation2 + $0x18] sm:$0xff] }
   0xc   :  { %249 = vmatpush.bf16.msra.mxu1 %v579_v6  ;;  %v591_v18 = vld [vmem:[%s758_s3 + $0x28] sm:$0xff]  ;;  %v576_v20 = vld [vmem:[#allocation2 + $0x58] sm:$0xff]  ;;  %v567_v24 = vld [vmem:[#allocation2 + $0x10] sm:$0xff] }
   0xd   :  { %v581_v21 = vld [vmem:[#allocation2 + $0x80] sm:$0xff]  ;;  %v590_v23 = vld [vmem:[%s758_s3 + $0x20] sm:$0xff]  ;;  %v575_v25 = vld [vmem:[#allocation2 + $0x50] sm:$0xff] }
   0xe   :  { %345 = vmatpush.bf16.msra.mxu3 %v592_v14  ;;  %v566_v27 = vld [vmem:[#allocation2 + $0x8] sm:$0xff]  ;;  %v565_v29 = vld [vmem:[#allocation2] sm:$0xff]  ;;  %v589_v35 = vld [vmem:[%s758_s3 + $0x18] sm:$0xff] }
   0xf   :  { %265 = vmatpush.bf16.msra.mxu2 %v584_v8  ;;  %237 = vmatpush.bf16.msra.mxu0 %v570_v9  ;;  %v574_v28 = vld [vmem:[#allocation2 + $0x48] sm:$0xff]  ;;  %v573_v30 = vld [vmem:[#allocation2 + $0x40] sm:$0xff]  ;;  %v586_v38 = vld [vmem:[%s758_s3] sm:$0xff] }
  0x10   :  { %250 = vmatpush.bf16.msra.mxu1 %v578_v10  ;;  %v588_v36 = vld [vmem:[%s758_s3 + $0x10] sm:$0xff]  ;;  %v587_v37 = vld [vmem:[%s758_s3 + $0x8] sm:$0xff]  ;;  %v597_v39 = vld [vmem:[%s760_s5 + $0x18] sm:$0xff] }
  0x11   :  { %v49_v22 = vld.sshfl [vmem:[#allocation1 + $0x10] sm:$0xff pattern:$0x73625140]  ;;  %v47_v31 = vld.sshfl [vmem:[#allocation1] sm:$0xff pattern:$0x73625140] }
  0x12   :  { %346 = vmatpush.bf16.msra.mxu3 %v591_v18  ;;  %v55_v26 = vpack.c.bf16 %v49_v22, %v49_v22  ;;  %v48_v32 = vld.sshfl [vmem:[#allocation1 + $0x8] sm:$0xff pattern:$0x73625140]  ;;  %v53_v33 = vpack.c.bf16 %v47_v31, %v47_v31  ;;  %v596_v40 = vld [vmem:[%s760_s5 + $0x10] sm:$0xff]  ;;  %v602_v43 = vld [vmem:[%s757_s2] ss:$0 sm:$0xff] }
  0x13   :  { %266 = vmatpush.bf16.msra.mxu2 %v583_v13  ;;  %238 = vmatpush.bf16.msra.mxu0 %v569_v15  ;;  %v54_v34 = vpack.c.bf16 %v48_v32, %v48_v32  ;;  %v595_v41 = vld [vmem:[%s760_s5 + $0x8] sm:$0xff]  ;;  %v594_v54 = vld [vmem:[%s760_s5] sm:$0xff] }
  0x14   :  { %251 = vmatpush.bf16.msra.mxu1 %v577_v16  ;;  %v603_v55 = vld [vmem:[%s759_s4] ss:$0 sm:$0xff] }
  0x15   :  { %v604_v61 = vld [vmem:[%s761_s6] ss:$0 sm:$0xff] }
  0x16   :  { %347 = vmatpush.bf16.msra.mxu3 %v590_v23 }
  0x17   :  { %267 = vmatpush.bf16.msra.mxu2 %v582_v17  ;;  %239 = vmatpush.bf16.msra.mxu0 %v568_v19 }
  0x18   :  { %252 = vmatpush.bf16.msra.mxu1 %v576_v20 }
  0x1a   :  { %348 = vmatpush.bf16.msra.mxu3 %v589_v35 }
  0x1b   :  { %268 = vmatpush.bf16.msra.mxu2 %v581_v21  ;;  %240 = vmatpush.bf16.msra.mxu0 %v567_v24 }
  0x1c   :  { %253 = vmatpush.bf16.msra.mxu1 %v575_v25 }
  0x1e   :  { %515 = vmatmul.msk.bf16.vlgmr.msra.gmra.mxu2 %vm227_vm1, %v55_v26  ;;  %349 = vmatpush.bf16.msra.mxu3 %v588_v36 }
  0x1f   :  { %241 = vmatpush.bf16.msra.mxu0 %v566_v27  ;;  %403 = vmatpush.bf16.msrb.mxu2 %v597_v39 }
  0x20   :  { %254 = vmatpush.bf16.msra.mxu1 %v574_v28 }
  0x22   :  { %350 = vmatpush.bf16.msra.mxu3 %v587_v37 }
  0x23   :  { %242 = vmatpush.bf16.msra.mxu0 %v565_v29  ;;  %404 = vmatpush.bf16.msrb.mxu2 %v596_v40 }
  0x24   :  { %255 = vmatpush.bf16.msra.mxu1 %v573_v30 }
  0x26   :  { %243 = vmatmul.bf16.vlgmr.msra.gmra.mxu0 %v53_v33  ;;  %351 = vmatpush.bf16.msra.mxu3 %v586_v38 }
  0x27   :  { %256 = vmatmul.bf16.vlgmr.msra.gmra.mxu1 %v54_v34  ;;  %405 = vmatpush.bf16.msrb.mxu2 %v595_v41 }
  0x2b   :  { %406 = vmatpush.bf16.msrb.mxu2 %v594_v54 }
  0xa1   :  { %v270_v42 = vpop.f32.mrf.mxu2 }
  0xa3   :  { %v244_v44 = vpop.f32.mrf.mxu0 }
  0xa4   :  { %v257_v45 = vpop.f32.mrf.mxu1  ;;  %v245_v46 = vadd.f32 %v602_v43, %v244_v44 }
  0xa6   :  { %v258_v47 = vadd.f32 %v257_v45, %v245_v46 }
  0xa8   :  { %v271_v49 = vadd.f32 %v270_v42, %v258_v47 }
  0xa9   :  { %v272_v48 = vpop.f32.mrf.mxu2 }
  0xaa   :  { %v274_v50 = vmax.f32 %v271_v49, 0.0 }
  0xab   :  { %v246_v51 = vpop.f32.mrf.mxu0 }
  0xac   :  { %v259_v52 = vpop.f32.mrf.mxu1  ;;  %v275_v53 = vpack.c.bf16 %v274_v50, %v274_v50 }
  0xae   :  { %352 = vmatmul.bf16.vlgmr.msra.gmra.mxu3 %v275_v53 }
 0x131   :  { %v353_v56 = vpop.f32.mrf.mxu3 }
 0x132   :  { %v354_v57 = vadd.f32 %v603_v55, %v353_v56 }
 0x134   :  { %v357_v58 = vmax.f32 %v354_v57, 0.0 }
 0x136   :  { %v358_v59 = vpack.c.bf16 %v357_v58, %v357_v58 }
 0x138   :  { %564 = vmatmul.msk.bf16.vlgmr.msrb.gmra.mxu2 %vm395_vm2, %v358_v59 }
 0x139   :  { %v355_v60 = vpop.f32.mrf.mxu3 }
 0x1bb   :  { %v408_v62 = vpop.f32.mrf.mxu2 }
 0x1bc   :  { %v409_v63 = vadd.f32 %v604_v61, %v408_v62 }
 0x1be   :  { %413 = vst.msk [vmem:[#allocation5] sm:$0x3] %vm412_vm3, %v409_v63 }
 0x1bf   :  { %424 = dma.vmem_to_hbm [thread:$0]  %s420_s0, 32, %s422_s14, [#allocation4]  }
 0x1c3   :  { %v410_v0 = vpop.f32.mrf.mxu2 }
 0x1c4   :  { %655 = dma.done.wait [#allocation4], 32  }
 0x1c5   :  { %656 = vsyncadd [#allocation4], 4294967264 }
 0x1c6   :  { %429 = vsyncpa [#allocation3], 1 }
 0x1c7   :  { %430 = vsyncpa [#allocation4], 1 }

</bundles_post_ra>
